<compile_context>
chip_gen: v5e
topology: v5e:2x2
jax: 0.10.0
libtpu: 0.0.40
codegen_flags: <defaults>
</compile_context>

<pallas_src>
import math
import numpy as np
import jax
import jax.numpy as jnp
from jax import lax
from jax.experimental import pallas as pl
from jax.experimental.pallas import tpu as pltpu

# ---- small GPT-J config ----
B = 2              # batch
S = 8              # seq len
E = 32             # n_embd / hidden_size
H = 4              # num_attention_heads
HD = E // H        # head_dim = 8
RD = 4             # rotary_dim (even, <= head_dim)
INNER = 4 * E      # n_inner = 128
N = B * S          # flattened rows
HN = H * N         # merged head*key columns of the score matrix
LN_EPS = 1e-5
SCALE = float(np.sqrt(HD))
INV_SCALE = 1.0 / SCALE
MASK_BIAS = -1e9   # additive mask (safe: exp underflows to exactly 0)
NEG_INF = float(np.finfo(np.float32).min)
GELU_C = math.sqrt(2.0 / math.pi)

# fused projection column offsets: [ q | q@R | k | k@R | v | fc_in ]
OFF_Q, OFF_QR, OFF_K, OFF_KR, OFF_V, OFF_FF = 0, E, 2 * E, 3 * E, 4 * E, 5 * E
FUSED_W = 5 * E + INNER


def gptj_block_kernel(x_ref, g_ref, b_ref,
                      wf_ref, b1_ref,
                      cos_ref, sin_ref,
                      kvm_ref, bias_ref,
                      wc_ref, b2_ref,
                      out_ref):
    x = x_ref[...]                                         # (N, E)

    # ---- LayerNorm (ln_1) ----
    mu = jnp.mean(x, axis=-1, keepdims=True)
    var = jnp.mean(jnp.square(x - mu), axis=-1, keepdims=True)
    h = (x - mu) * lax.rsqrt(var + LN_EPS)
    h = h * g_ref[...] + b_ref[...]                        # (N, E)

    # ---- one fused projection: [ q | q@R | k | k@R | v | fc_in ] ----
    fused = jnp.dot(h, wf_ref[...], preferred_element_type=jnp.float32)  # (N, 5E+INNER)
    q = fused[:, OFF_Q:OFF_QR]                             # 1/sqrt(d) pre-folded
    q_rb = fused[:, OFF_QR:OFF_K]                          # rotate_every_two basis of q
    k = fused[:, OFF_K:OFF_KR]
    k_rb = fused[:, OFF_KR:OFF_V]
    v = fused[:, OFF_V:OFF_FF]
    ff = fused[:, OFF_FF:] + b1_ref[...]                   # fc_in bias

    # ---- rotary (tables are 1/0 on pass-through dims; rotation folded into weights) ----
    cos = cos_ref[...]
    sin = sin_ref[...]
    q = q * cos + q_rb * sin                               # (N, E)
    k = k * cos + k_rb * sin                               # (N, E)

    # ---- all-head scores via a head-block-diagonal key matrix (NT matmul) ----
    kvm = kvm_ref[...]                                     # (HN, E) head selector
    k_bd = jnp.concatenate([k] * H, axis=0) * kvm          # (HN, E)
    s = lax.dot_general(q, k_bd, (((1,), (1,)), ((), ())),
                        preferred_element_type=jnp.float32)  # (N, HN)
    s = s + bias_ref[...]                                  # causal + batch mask (scale folded)
    m = jnp.max(s, axis=-1, keepdims=True)
    p = jnp.exp(s - m)                                     # masked entries -> exactly 0

    # ---- weighted values + per-head softmax denominators in ONE matmul ----
    v_cat = jnp.concatenate([jnp.concatenate([v] * H, axis=0) * kvm, kvm], axis=1)  # (HN, 2E)
    av = jnp.dot(p, v_cat, preferred_element_type=jnp.float32)                      # (N, 2E)
    attn = av[:, :E] * pl.reciprocal(av[:, E:], approx=True)                        # (N, E)

    # ---- MLP activation (gelu_new) ----
    ff = 0.5 * ff * (1.0 + jnp.tanh(GELU_C * (ff + 0.044715 * ff * ff * ff)))

    # ---- fused out_proj + fc_out, then parallel residual ----
    comb = jnp.concatenate([attn, ff], axis=1)             # (N, E+INNER)
    out = jnp.dot(comb, wc_ref[...], preferred_element_type=jnp.float32)
    out_ref[...] = out + b2_ref[...] + x


def gptj_block(x, params):
    x2 = x.reshape(N, E)
    inputs = (
        x2,
        params["ln_g"], params["ln_b"],
        params["w_fused"], params["b1"],
        params["cos_q"], params["sin_q"],
        params["kv_mask"], params["bias_mask"],
        params["w_comb"], params["b2"],
    )
    vmem = pl.BlockSpec(memory_space=pltpu.MemorySpace.VMEM)
    out = pl.pallas_call(
        gptj_block_kernel,
        out_shape=jax.ShapeDtypeStruct((N, E), jnp.float32),
        in_specs=[vmem] * len(inputs),
        out_specs=vmem,
    )(*inputs)
    return out.reshape(B, S, E)


def make_tables():
    # duplicate-interleaved rotary sin/cos over the full embed axis (1/0 on pass dims)
    inv_freq = 1.0 / (10000.0 ** (np.arange(0, RD, 2, dtype=np.float32) / RD))
    pos = np.arange(S, dtype=np.float32)
    sinusoid = pos[:, None] * inv_freq[None, :]                 # (S, RD/2)
    sin_d = np.repeat(np.sin(sinusoid), 2, axis=1).astype(np.float32)
    cos_d = np.repeat(np.cos(sinusoid), 2, axis=1).astype(np.float32)
    cos_se = np.ones((S, E), np.float32)
    sin_se = np.zeros((S, E), np.float32)
    for hh in range(H):
        cos_se[:, hh * HD:hh * HD + RD] = cos_d
        sin_se[:, hh * HD:hh * HD + RD] = sin_d
    cos_q = np.tile(cos_se, (B, 1))                             # (N, E)
    sin_q = np.tile(sin_se, (B, 1))

    # rotate_every_two as a block-diagonal signed permutation (folded into weights)
    r_small = np.zeros((RD, RD), np.float32)
    for i in range(RD // 2):
        r_small[2 * i + 1, 2 * i] = -1.0
        r_small[2 * i, 2 * i + 1] = 1.0
    R_full = np.zeros((E, E), np.float32)
    for hh in range(H):
        R_full[hh * HD:hh * HD + RD, hh * HD:hh * HD + RD] = r_small

    # head selector: row c (head = c // N) may only touch its own head's embed dims
    head_of_e = np.arange(E) // HD                              # (E,)
    head_of_c = np.arange(HN) // N                              # (HN,)
    kv_mask = (head_of_c[:, None] == head_of_e[None, :]).astype(np.float32)  # (HN, E)

    # additive batch-block-diagonal + causal mask over the merged score columns
    rows = np.arange(N)
    cols = np.arange(HN)
    key_row = cols % N
    valid = ((rows[:, None] // S) == (key_row[None, :] // S)) & \
            ((key_row[None, :] % S) <= (rows[:, None] % S))
    bias_mask = np.where(valid, 0.0, MASK_BIAS).astype(np.float32)            # (N, HN)
    return cos_q, sin_q, R_full, kv_mask, bias_mask


def make_params(key):
    ks = jax.random.split(key, 10)
    n = lambda k, shape, s=0.02: (s * jax.random.normal(k, shape)).astype(jnp.float32)
    p = {
        "ln_g": (1.0 + n(ks[0], (1, E), 0.1)).astype(jnp.float32),
        "ln_b": n(ks[1], (1, E), 0.1),
        "wq_t": n(ks[2], (E, E)),
        "wk_t": n(ks[3], (E, E)),
        "wv_t": n(ks[4], (E, E)),
        "wo_t": n(ks[5], (E, E)),
        "w1_t": n(ks[6], (E, INNER)),
        "b1":   n(ks[7], (1, INNER)),
        "w2_t": n(ks[8], (INNER, E)),
        "b2":   n(ks[9], (1, E)),
    }
    cos_q, sin_q, R_full, kv_mask, bias_mask = make_tables()
    R = jnp.asarray(R_full)
    p["cos_q"] = jnp.asarray(cos_q)
    p["sin_q"] = jnp.asarray(sin_q)
    p["kv_mask"] = jnp.asarray(kv_mask)
    p["bias_mask"] = jnp.asarray(bias_mask)
    # fold 1/sqrt(head_dim) into the Q projection (linear; rotary commutes with it)
    wq_s = p["wq_t"] * INV_SCALE
    # fused row-major projection: [ wq/sqrt(d) | (wq/sqrt(d))@R | wk | wk@R | wv | w1 ]
    p["w_fused"] = jnp.concatenate(
        [wq_s, wq_s @ R, p["wk_t"], p["wk_t"] @ R, p["wv_t"], p["w1_t"]], axis=1)
    # fused output projection: [ wo ; w2 ] applied to [attn | gelu(fc_in)]
    p["w_comb"] = jnp.concatenate([p["wo_t"], p["w2_t"]], axis=0)
    return p


def ref_forward(x, p):
    """Pure-JAX reference mirroring the PyTorch GPTJBlock forward."""
    mean = x.mean(-1, keepdims=True)
    var = ((x - mean) ** 2).mean(-1, keepdims=True)
    h = (x - mean) / jnp.sqrt(var + LN_EPS) * p["ln_g"][0] + p["ln_b"][0]

    q = h @ p["wq_t"]
    k = h @ p["wk_t"]
    v = h @ p["wv_t"]
    qh = q.reshape(B, S, H, HD)
    kh = k.reshape(B, S, H, HD)
    vh = v.reshape(B, S, H, HD)

    inv_freq = 1.0 / (10000.0 ** (jnp.arange(0, RD, 2, dtype=jnp.float32) / RD))
    sinusoid = jnp.arange(S, dtype=jnp.float32)[:, None] * inv_freq[None, :]
    sin_d = jnp.repeat(jnp.sin(sinusoid), 2, axis=1)[None, :, None, :]
    cos_d = jnp.repeat(jnp.cos(sinusoid), 2, axis=1)[None, :, None, :]

    def rot(t):
        t1 = t[..., ::2]
        t2 = t[..., 1::2]
        return jnp.stack((-t2, t1), axis=-1).reshape(t.shape)

    q_rot = qh[..., :RD] * cos_d + rot(qh[..., :RD]) * sin_d
    k_rot = kh[..., :RD] * cos_d + rot(kh[..., :RD]) * sin_d
    qh = jnp.concatenate([q_rot, qh[..., RD:]], axis=-1).transpose(0, 2, 1, 3)
    kh = jnp.concatenate([k_rot, kh[..., RD:]], axis=-1).transpose(0, 2, 1, 3)
    vh = vh.transpose(0, 2, 1, 3)

    scores = jnp.einsum("bhqd,bhkd->bhqk", qh, kh)
    causal = jnp.tril(jnp.ones((S, S), bool))
    scores = jnp.where(causal, scores, NEG_INF) / SCALE
    w = jax.nn.softmax(scores, axis=-1)
    attn = jnp.einsum("bhqk,bhkd->bhqd", w, vh).transpose(0, 2, 1, 3).reshape(B, S, E)
    attn = attn @ p["wo_t"]

    ff = h @ p["w1_t"] + p["b1"][0]
    ff = 0.5 * ff * (1.0 + jnp.tanh(GELU_C * (ff + 0.044715 * ff ** 3)))
    ff = ff @ p["w2_t"] + p["b2"][0]
    return attn + ff + x


if __name__ == "__main__":
    key = jax.random.PRNGKey(0)
    kx, kp = jax.random.split(key)
    x = jax.random.normal(kx, (B, S, E), dtype=jnp.float32)
    params = make_params(kp)

    out = jax.block_until_ready(gptj_block(x, params))

    ref = jax.block_until_ready(ref_forward(x, params))
    max_err = float(jnp.max(jnp.abs(out - ref)))
    assert out.shape == (B, S, E)
    assert max_err < 1e-2, f"mismatch vs reference: {max_err}"
    # TODO(synk): dropout (attn/resid/mlp) is identity (eval), layer_past/use_cache not modeled.
    print("KERNEL_OK")
</pallas_src>

<mosaic_0001>
module attributes {stable_mosaic.version = 11 : i64} {
  func.func @gptj_block_kernel(%arg0: memref<16x32xf32, #tpu.memory_space<vmem>>, %arg1: memref<1x32xf32, #tpu.memory_space<vmem>>, %arg2: memref<1x32xf32, #tpu.memory_space<vmem>>, %arg3: memref<32x288xf32, #tpu.memory_space<vmem>>, %arg4: memref<1x128xf32, #tpu.memory_space<vmem>>, %arg5: memref<16x32xf32, #tpu.memory_space<vmem>>, %arg6: memref<16x32xf32, #tpu.memory_space<vmem>>, %arg7: memref<64x32xf32, #tpu.memory_space<vmem>>, %arg8: memref<16x64xf32, #tpu.memory_space<vmem>>, %arg9: memref<160x32xf32, #tpu.memory_space<vmem>>, %arg10: memref<1x32xf32, #tpu.memory_space<vmem>>, %arg11: memref<16x32xf32, #tpu.memory_space<vmem>>) attributes {dimension_semantics = [], scalar_prefetch = 0 : i64, scratch_operands = 0 : i64, tpu.core_type = #tpu.core_type<tc>} {
    %c0 = arith.constant 0 : index
    %c0_0 = arith.constant 0 : index
    %0 = vector.load %arg0[%c0, %c0_0] : memref<16x32xf32, #tpu.memory_space<vmem>>, vector<16x32xf32>
    %cst = arith.constant dense<0.000000e+00> : vector<16xf32>
    %1 = vector.multi_reduction <add>, %0, %cst [1] : vector<16x32xf32> to vector<16xf32>
    %2 = vector.shape_cast %1 : vector<16xf32> to vector<16x1xf32>
    %cst_1 = arith.constant 3.200000e+01 : f32
    %3 = vector.broadcast %cst_1 : f32 to vector<16x1xf32>
    %4 = arith.divf %2, %3 : vector<16x1xf32>
    %5 = vector.broadcast %4 : vector<16x1xf32> to vector<16x32xf32>
    %6 = arith.subf %0, %5 : vector<16x32xf32>
    %7 = arith.mulf %6, %6 : vector<16x32xf32>
    %cst_2 = arith.constant dense<0.000000e+00> : vector<16xf32>
    %8 = vector.multi_reduction <add>, %7, %cst_2 [1] : vector<16x32xf32> to vector<16xf32>
    %9 = vector.shape_cast %8 : vector<16xf32> to vector<16x1xf32>
    %cst_3 = arith.constant 3.200000e+01 : f32
    %10 = vector.broadcast %cst_3 : f32 to vector<16x1xf32>
    %11 = arith.divf %9, %10 : vector<16x1xf32>
    %12 = vector.broadcast %4 : vector<16x1xf32> to vector<16x32xf32>
    %13 = arith.subf %0, %12 : vector<16x32xf32>
    %cst_4 = arith.constant 9.99999974E-6 : f32
    %14 = vector.broadcast %cst_4 : f32 to vector<16x1xf32>
    %15 = arith.addf %11, %14 : vector<16x1xf32>
    %16 = math.rsqrt %15 : vector<16x1xf32>
    %17 = vector.broadcast %16 : vector<16x1xf32> to vector<16x32xf32>
    %18 = arith.mulf %13, %17 : vector<16x32xf32>
    %c0_5 = arith.constant 0 : index
    %c0_6 = arith.constant 0 : index
    %19 = vector.load %arg1[%c0_5, %c0_6] : memref<1x32xf32, #tpu.memory_space<vmem>>, vector<1x32xf32>
    %20 = vector.broadcast %19 : vector<1x32xf32> to vector<16x32xf32>
    %21 = arith.mulf %18, %20 : vector<16x32xf32>
    %c0_7 = arith.constant 0 : index
    %c0_8 = arith.constant 0 : index
    %22 = vector.load %arg2[%c0_7, %c0_8] : memref<1x32xf32, #tpu.memory_space<vmem>>, vector<1x32xf32>
    %23 = vector.broadcast %22 : vector<1x32xf32> to vector<16x32xf32>
    %24 = arith.addf %21, %23 : vector<16x32xf32>
    %c0_9 = arith.constant 0 : index
    %c0_10 = arith.constant 0 : index
    %25 = vector.load %arg3[%c0_9, %c0_10] : memref<32x288xf32, #tpu.memory_space<vmem>>, vector<32x288xf32>
    %cst_11 = arith.constant dense<0.000000e+00> : vector<16x288xf32>
    %26 = tpu.matmul %24, %25, %cst_11 {dimension_numbers = #tpu.dot_dimension_numbers<[1], [0], [0], [1], [0, 0, 1, 1], [], []>} : vector<16x32xf32>, vector<32x288xf32>, vector<16x288xf32> -> vector<16x288xf32>
    %27 = vector.extract_strided_slice %26 {offsets = [0, 0], sizes = [16, 32], strides = [1, 1]} : vector<16x288xf32> to vector<16x32xf32>
    %28 = vector.extract_strided_slice %26 {offsets = [0, 32], sizes = [16, 32], strides = [1, 1]} : vector<16x288xf32> to vector<16x32xf32>
    %29 = vector.extract_strided_slice %26 {offsets = [0, 64], sizes = [16, 32], strides = [1, 1]} : vector<16x288xf32> to vector<16x32xf32>
    %30 = vector.extract_strided_slice %26 {offsets = [0, 96], sizes = [16, 32], strides = [1, 1]} : vector<16x288xf32> to vector<16x32xf32>
    %31 = vector.extract_strided_slice %26 {offsets = [0, 128], sizes = [16, 32], strides = [1, 1]} : vector<16x288xf32> to vector<16x32xf32>
    %32 = vector.extract_strided_slice %26 {offsets = [0, 160], sizes = [16, 128], strides = [1, 1]} : vector<16x288xf32> to vector<16x128xf32>
    %c0_12 = arith.constant 0 : index
    %c0_13 = arith.constant 0 : index
    %33 = vector.load %arg4[%c0_12, %c0_13] : memref<1x128xf32, #tpu.memory_space<vmem>>, vector<1x128xf32>
    %34 = vector.broadcast %33 : vector<1x128xf32> to vector<16x128xf32>
    %35 = arith.addf %32, %34 : vector<16x128xf32>
    %c0_14 = arith.constant 0 : index
    %c0_15 = arith.constant 0 : index
    %36 = vector.load %arg5[%c0_14, %c0_15] : memref<16x32xf32, #tpu.memory_space<vmem>>, vector<16x32xf32>
    %c0_16 = arith.constant 0 : index
    %c0_17 = arith.constant 0 : index
    %37 = vector.load %arg6[%c0_16, %c0_17] : memref<16x32xf32, #tpu.memory_space<vmem>>, vector<16x32xf32>
    %38 = arith.mulf %27, %36 : vector<16x32xf32>
    %39 = arith.mulf %28, %37 : vector<16x32xf32>
    %40 = arith.addf %38, %39 : vector<16x32xf32>
    %41 = arith.mulf %29, %36 : vector<16x32xf32>
    %42 = arith.mulf %30, %37 : vector<16x32xf32>
    %43 = arith.addf %41, %42 : vector<16x32xf32>
    %c0_18 = arith.constant 0 : index
    %c0_19 = arith.constant 0 : index
    %44 = vector.load %arg7[%c0_18, %c0_19] : memref<64x32xf32, #tpu.memory_space<vmem>>, vector<64x32xf32>
    %45 = tpu.concatenate %43, %43, %43, %43 in 0 : vector<16x32xf32>, vector<16x32xf32>, vector<16x32xf32>, vector<16x32xf32> -> vector<64x32xf32>
    %46 = arith.mulf %45, %44 : vector<64x32xf32>
    %cst_20 = arith.constant dense<0.000000e+00> : vector<16x64xf32>
    %47 = tpu.matmul %40, %46, %cst_20 {dimension_numbers = #tpu.dot_dimension_numbers<[1], [1], [0], [0], [0, 0, 1, 0], [], []>} : vector<16x32xf32>, vector<64x32xf32>, vector<16x64xf32> -> vector<16x64xf32>
    %c0_21 = arith.constant 0 : index
    %c0_22 = arith.constant 0 : index
    %48 = vector.load %arg8[%c0_21, %c0_22] : memref<16x64xf32, #tpu.memory_space<vmem>>, vector<16x64xf32>
    %49 = arith.addf %47, %48 : vector<16x64xf32>
    %cst_23 = arith.constant dense<0xFF800000> : vector<16xf32>
    %50 = vector.multi_reduction <maximumf>, %49, %cst_23 [1] : vector<16x64xf32> to vector<16xf32>
    %51 = vector.shape_cast %50 : vector<16xf32> to vector<16x1xf32>
    %52 = vector.broadcast %51 : vector<16x1xf32> to vector<16x64xf32>
    %53 = arith.subf %49, %52 : vector<16x64xf32>
    %54 = math.exp %53 : vector<16x64xf32>
    %55 = tpu.concatenate %31, %31, %31, %31 in 0 : vector<16x32xf32>, vector<16x32xf32>, vector<16x32xf32>, vector<16x32xf32> -> vector<64x32xf32>
    %56 = arith.mulf %55, %44 : vector<64x32xf32>
    %57 = tpu.concatenate %56, %44 in 1 : vector<64x32xf32>, vector<64x32xf32> -> vector<64x64xf32>
    %cst_24 = arith.constant dense<0.000000e+00> : vector<16x64xf32>
    %58 = tpu.matmul %54, %57, %cst_24 {dimension_numbers = #tpu.dot_dimension_numbers<[1], [0], [0], [1], [0, 0, 1, 1], [], []>} : vector<16x64xf32>, vector<64x64xf32>, vector<16x64xf32> -> vector<16x64xf32>
    %59 = vector.extract_strided_slice %58 {offsets = [0, 0], sizes = [16, 32], strides = [1, 1]} : vector<16x64xf32> to vector<16x32xf32>
    %60 = vector.extract_strided_slice %58 {offsets = [0, 32], sizes = [16, 32], strides = [1, 1]} : vector<16x64xf32> to vector<16x32xf32>
    %61 = tpu.reciprocal %60 {approx = true} : vector<16x32xf32> -> vector<16x32xf32>
    %62 = arith.mulf %59, %61 : vector<16x32xf32>
    %cst_25 = arith.constant 5.000000e-01 : f32
    %63 = vector.broadcast %cst_25 : f32 to vector<16x128xf32>
    %64 = arith.mulf %63, %35 : vector<16x128xf32>
    %cst_26 = arith.constant 4.471500e-02 : f32
    %65 = vector.broadcast %cst_26 : f32 to vector<16x128xf32>
    %66 = arith.mulf %65, %35 : vector<16x128xf32>
    %67 = arith.mulf %66, %35 : vector<16x128xf32>
    %68 = arith.mulf %67, %35 : vector<16x128xf32>
    %69 = arith.addf %35, %68 : vector<16x128xf32>
    %cst_27 = arith.constant 0.797884583 : f32
    %70 = vector.broadcast %cst_27 : f32 to vector<16x128xf32>
    %71 = arith.mulf %70, %69 : vector<16x128xf32>
    %72 = math.tanh %71 : vector<16x128xf32>
    %cst_28 = arith.constant 1.000000e+00 : f32
    %73 = vector.broadcast %cst_28 : f32 to vector<16x128xf32>
    %74 = arith.addf %73, %72 : vector<16x128xf32>
    %75 = arith.mulf %64, %74 : vector<16x128xf32>
    %76 = tpu.concatenate %62, %75 in 1 : vector<16x32xf32>, vector<16x128xf32> -> vector<16x160xf32>
    %c0_29 = arith.constant 0 : index
    %c0_30 = arith.constant 0 : index
    %77 = vector.load %arg9[%c0_29, %c0_30] : memref<160x32xf32, #tpu.memory_space<vmem>>, vector<160x32xf32>
    %cst_31 = arith.constant dense<0.000000e+00> : vector<16x32xf32>
    %78 = tpu.matmul %76, %77, %cst_31 {dimension_numbers = #tpu.dot_dimension_numbers<[1], [0], [0], [1], [0, 0, 1, 1], [], []>} : vector<16x160xf32>, vector<160x32xf32>, vector<16x32xf32> -> vector<16x32xf32>
    %c0_32 = arith.constant 0 : index
    %c0_33 = arith.constant 0 : index
    %79 = vector.load %arg10[%c0_32, %c0_33] : memref<1x32xf32, #tpu.memory_space<vmem>>, vector<1x32xf32>
    %80 = vector.broadcast %79 : vector<1x32xf32> to vector<16x32xf32>
    %81 = arith.addf %78, %80 : vector<16x32xf32>
    %82 = arith.addf %81, %0 : vector<16x32xf32>
    %c0_34 = arith.constant 0 : index
    %c0_35 = arith.constant 0 : index
    %83 = vector.load %arg11[%c0_34, %c0_35] : memref<16x32xf32, #tpu.memory_space<vmem>>, vector<16x32xf32>
    tpu.vector_store %arg11[%c0_34, %c0_35], %82 {strides = array<i32>} : memref<16x32xf32, #tpu.memory_space<vmem>>, vector<16x32xf32>,
    return
  }
}

</mosaic_0001>

<bundles_post_ra>
// kernel: tpu_custom_call.1
= control target key start
LH: loop header
LB: loop body
LE: loop exit
PB: predicated region body
PF: predicated region fallthrough
CT: control target
= control target key end

     0   :  { %vm41_vm0 = vcmask 261120   ;;  %s1113_s0 = inlined_call_operand.vmem [shape: f32[16,32], index: 0, kind: input, shape index: {}]   ;;  %s1114_s1 = inlined_call_operand.vmem [shape: f32[1,32], index: 1, kind: input, shape index: {}]   ;;  %s1115_s2 = inlined_call_operand.vmem [shape: f32[1,32], index: 2, kind: input, shape index: {}]   ;;  %s1116_s3 = inlined_call_operand.vmem [shape: f32[32,288], index: 3, kind: input, shape index: {}]   ;;  %s1117_s4 = inlined_call_operand.vmem [shape: f32[1,128], index: 4, kind: input, shape index: {}]   ;;  %s1118_s5 = inlined_call_operand.vmem [shape: f32[16,32], index: 5, kind: input, shape index: {}]   ;;  %s1119_s6 = inlined_call_operand.vmem [shape: f32[16,32], index: 6, kind: input, shape index: {}]   ;;  %s1120_s7 = inlined_call_operand.vmem [shape: f32[64,32], index: 7, kind: input, shape index: {}]   ;;  %s1121_s8 = inlined_call_operand.vmem [shape: f32[16,64], index: 8, kind: input, shape index: {}]   ;;  %s1122_s9 = inlined_call_operand.vmem [shape: f32[160,32], index: 9, kind: input, shape index: {}]   ;;  %s1123_s10 = inlined_call_operand.vmem [shape: f32[1,32], index: 10, kind: input, shape index: {}]   ;;  %s1124_s11 = inlined_call_operand.hbm [shape: f32[16,32], index: 11, kind: output, shape index: {}]  }
   0x1   :  { %v774_v0 = vld [vmem:[%s1113_s0] sm:$0xff] }
   0x2   :  { %v42_v1 = vsel %vm41_vm0, %v774_v0, 0.0 }
   0x3   :  { %43 = vadd.xlane.f32.xlu0 %v42_v1 }
   0x4   :  { %16 = vsyncpa [#allocation3], 0  ;;  %v781_v2 = vld [vmem:[%s1113_s0 + $0x8] sm:$0xff]  ;;  %v704_v4 = vmov 32.0   ;;  %v115_v22 = vld [vmem:[%s1116_s3 + $0x50] sm:$0xff]  ;;  %s705_s28 = smov 96  }
   0x5   :  { %v45_v3 = vsel %vm41_vm0, %v781_v2, 0.0  ;;  %656 = vrcp.f32 %v704_v4  ;;  %v114_v21 = vld [vmem:[%s1116_s3 + $0x48] sm:$0xff]  ;;  %v116_v23 = vld [vmem:[%s1116_s3 + $0x58] sm:$0xff]  ;;  %158 = vmatpush.msra.mxu1 %v115_v22  ;;  %v111_v24 = vld [vmem:[%s1116_s3 + $0x30] sm:$0xff]  ;;  %s707_s30 = smov 32   ;;  %vm375_vm8 = vcmask 523264  }
   0x6   :  { %135 = vmatpush.msra.mxu0 %v114_v21  ;;  %181 = vmatpush.msra.mxu2 %v116_v23  ;;  %v112_v25 = vld [vmem:[%s1116_s3 + $0x38] sm:$0xff]  ;;  %v113_v26 = vld [vmem:[%s1116_s3 + $0x40] sm:$0xff]  ;;  %v110_v29 = vld [vmem:[%s1116_s3 + $0x28] sm:$0xff]  ;;  %s708_s22 = smov [#allocation2]   ;;  %s593_s26 = sshll.u32 %s1124_s11, 4  ;;  %s594_s26 = int_to_ptr.hbm [resolvable:$true] %s593_s26 }
   0x7   :  { %159 = vmatpush.msra.mxu1 %v112_v25  ;;  %v108_v27 = vld [vmem:[%s1116_s3 + $0x18] sm:$0xff]  ;;  %v109_v28 = vld [vmem:[%s1116_s3 + $0x20] sm:$0xff]  ;;  %v106_v31 = vld [vmem:[%s1116_s3 + $0x8] sm:$0xff]  ;;  %s591_s23 = sshll.u32 %s708_s22, 4  ;;  %s710_s27 = smov 8   ;;  %s592_s23 = int_to_ptr.vmem [resolvable:$true] %s591_s23 }
   0x8   :  { %136 = vmatpush.msra.mxu0 %v111_v24  ;;  %182 = vmatpush.msra.mxu2 %v113_v26  ;;  %v105_v30 = vld [vmem:[%s1116_s3] sm:$0xff]  ;;  %v107_v32 = vld [vmem:[%s1116_s3 + $0x10] sm:$0xff]  ;;  %v836_v36 = vld [vmem:[%s1119_s6 + $0x8] sm:$0xff]  ;;  %s706_s3 = smov 64  }
   0x9   :  { %160 = vmatpush.msra.mxu1 %v109_v28  ;;  %v841_v37 = vld [vmem:[%s1118_s5 + $0x8] sm:$0xff]  ;;  %240 = vrot.lane.b32.xlu2 %v836_v36, %s705_s28  ;;  %v204_v43 = vld [vmem:[%s1119_s6] sm:$0xff]  ;;  %v853_v44 = vld [vmem:[%s1120_s7 + $0x30] sm:$0xff] }
   0xa   :  { %137 = vmatpush.msra.mxu0 %v108_v27  ;;  %183 = vmatpush.msra.mxu2 %v110_v29  ;;  %v861_v51 = vld [vmem:[%s1118_s5] sm:$0xff]  ;;  %v866_v52 = vld [vmem:[%s1120_s7 + $0x18] sm:$0xff] }
   0xb   :  { %46 = vadd.xlane.f32.xlu0 %v45_v3  ;;  %v657_v5 = vpop.eup %656  ;;  %161 = vmatpush.msra.mxu1 %v106_v31  ;;  %v652_v53 = vld [vmem:[%s1114_s1] ss:$0 sm:$0xff] }
   0xc   :  { %v49_v6 = vmul.f32 32.0, %v657_v5  ;;  %vm53_vm1 = vweird.f32 %v657_v5  ;;  %138 = vmatpush.msra.mxu0 %v105_v30  ;;  %184 = vmatpush.msra.mxu2 %v107_v32  ;;  %v653_v57 = vld [vmem:[%s1115_s2] ss:$0 sm:$0xff] }
   0xd   :  { %v882_v63 = vld [vmem:[%s1120_s7] sm:$0xff] }
   0xe   :  { %v50_v7 = vsub.f32 1.0, %v49_v6  ;;  %v896_v6 = vld [vmem:[%s1120_s7 + $0x38] sm:$0xff] }
  0x10   :  { %v51_v8 = vmul.f32 %v657_v5, %v50_v7 }
  0x11   :  { %238 = vrot.lane.b32.xlu2 %v204_v43, %s705_s28 }
  0x12   :  { %v52_v9 = vadd.f32 %v657_v5, %v51_v8 }
  0x14   :  { %v54_v10 = vsel %vm53_vm1, %v657_v5, %v52_v9 }
  0x19   :  { %230 = vrot.lane.b32.xlu2 %v861_v51, %s706_s3 }
  0x1f   :  { %232 = vrot.lane.b32.xlu0 %v841_v37, %s706_s3 }
  0x21   :  { %286 = vrot.lane.b32.xlu2 %v896_v6, %s706_s3 }
  0x27   :  { %284 = vrot.lane.b32.xlu0 %v853_v44, %s706_s3 }
  0x2f   :  { %278 = vrot.lane.b32.xlu0 %v866_v52, %s706_s3 }
  0x37   :  { %272 = vrot.lane.b32.xlu0 %v882_v63, %s706_s3 }
  0x63   :  { %v241_v7 = vpop.permute.xlu2 %240 }
  0x6b   :  { %v239_v8 = vpop.permute.xlu2 %238 }
  0x76   :  { %v44_v11 = vpop.xlane.xlu0 %43 }
  0x77   :  { %v55_v12 = vmul.f32 %v54_v10, %v44_v11 }
  0x79   :  { %v786_v13 = vsub.f32 %v774_v0, %v55_v12 }
  0x7b   :  { %v59_v14 = vmul.f32 %v786_v13, %v786_v13 }
  0x7d   :  { %v61_v15 = vsel %vm41_vm0, %v59_v14, 0.0  ;;  %v918_v14 = vld [vmem:[%s1120_s7 + $0x10] sm:$0xff] }
  0x7e   :  { %62 = vadd.xlane.f32.xlu1 %v61_v15  ;;  %v47_v16 = vpop.xlane.xlu0 %46  ;;  %v923_v15 = vld [vmem:[%s1120_s7 + $0x20] sm:$0xff] }
  0x7f   :  { %v56_v17 = vmul.f32 %v54_v10, %v47_v16  ;;  %v932_v16 = vld [vmem:[%s1120_s7 + $0x8] sm:$0xff] }
  0x81   :  { %v792_v18 = vsub.f32 %v781_v2, %v56_v17  ;;  %v231_v17 = vpop.permute.xlu2 %230 }
  0x83   :  { %v60_v19 = vmul.f32 %v792_v18, %v792_v18 }
  0x85   :  { %v64_v20 = vsel %vm41_vm0, %v60_v19, 0.0 }
  0x86   :  { %65 = vadd.xlane.f32.xlu1 %v64_v20 }
  0x91   :  { %v233_v19 = vpop.permute.xlu0 %232 }
  0x99   :  { %v285_v23 = vpop.permute.xlu0 %284 }
  0xa1   :  { %v279_v27 = vpop.permute.xlu0 %278 }
  0xf1   :  { %v63_v33 = vpop.xlane.xlu1 %62 }
  0xf2   :  { %v67_v34 = vmul.f32 %v63_v33, %v54_v10 }
  0xf4   :  { %v69_v35 = vadd.f32 1e-05, %v67_v34 }
  0xf6   :  { %658 = vrsqrt.f32 %v69_v35  ;;  %vm77_vm3 = vweird.f32 %v69_v35 }
  0xf9   :  { %v66_v38 = vpop.xlane.xlu1 %65 }
  0xfa   :  { %v68_v39 = vmul.f32 %v66_v38, %v54_v10 }
  0xfc   :  { %v659_v40 = vpop.eup %658  ;;  %v70_v41 = vadd.f32 1e-05, %v68_v39 }
  0xfd   :  { %v72_v42 = vmul.f32 %v659_v40, %v69_v35  ;;  %vm78_vm2 = vweird.f32 %v659_v40  ;;  %v273_v35 = vpop.permute.xlu0 %272 }
  0xfe   :  { %660 = vrsqrt.f32 %v70_v41  ;;  %vm79_vm4 = vmor %vm77_vm3, %vm78_vm2  ;;  %vm87_vm6 = vweird.f32 %v70_v41 }
  0xff   :  { %v73_v45 = vmul.f32 %v659_v40, %v72_v42  ;;  %v632_v42 = vpack.i.bf16 %v853_v44, %v896_v6 }
 0x101   :  { %v74_v46 = vmul.f32 0.5, %v73_v45 }
 0x103   :  { %v75_v47 = vsub.f32 1.5, %v74_v46 }
 0x104   :  { %v661_v48 = vpop.eup %660 }
 0x105   :  { %v76_v49 = vmul.f32 %v659_v40, %v75_v47  ;;  %v82_v50 = vmul.f32 %v661_v48, %v70_v41  ;;  %vm88_vm5 = vweird.f32 %v661_v48  ;;  %v642_v47 = vpack.i.bf16 %v918_v14, %v866_v52 }
 0x106   :  { %vm89_vm7 = vmor %vm87_vm6, %vm88_vm5 }
 0x107   :  { %v80_v54 = vsel %vm79_vm4, %v659_v40, %v76_v49  ;;  %v83_v55 = vmul.f32 %v661_v48, %v82_v50  ;;  %v647_v50 = vpack.i.bf16 %v882_v63, %v932_v16 }
 0x108   :  { %v91_v56 = vmul.f32 %v80_v54, %v786_v13  ;;  %v910_v13 = vld [vmem:[%s1120_s7 + $0x28] sm:$0xff] }
 0x109   :  { %v84_v58 = vmul.f32 0.5, %v83_v55  ;;  %v637_v49 = vpack.i.bf16 %v923_v15, %v910_v13 }
 0x10a   :  { %v97_v59 = vmul.f32 %v652_v53, %v91_v56 }
 0x10b   :  { %v85_v60 = vsub.f32 1.5, %v84_v58 }
 0x10c   :  { %v103_v61 = vadd.f32 %v653_v57, %v97_v59 }
 0x10d   :  { %v86_v62 = vmul.f32 %v661_v48, %v85_v60 }
 0x10e   :  { %605 = vmatmul.msk.f32.vlgmr.msra.gmra.mxu0 %vm41_vm0, %v103_v61  ;;  %607 = vmatmul.msk.f32.vlgmr.msra.gmra.mxu1 %vm41_vm0, %v103_v61 }
 0x10f   :  { %v90_v1 = vsel %vm89_vm7, %v661_v48, %v86_v62  ;;  %609 = vmatmul.msk.f32.vlgmr.msra.gmra.mxu2 %vm41_vm0, %v103_v61 }
 0x110   :  { %v92_v3 = vmul.f32 %v90_v1, %v792_v18  ;;  %v287_v18 = vpop.permute.xlu2 %286 }
 0x112   :  { %v98_v4 = vmul.f32 %v652_v53, %v92_v3  ;;  %v654_v53 = vld [vmem:[%s1117_s4] ss:$0 sm:$0xff] }
 0x114   :  { %v104_v5 = vadd.f32 %v653_v57, %v98_v4 }
 0x116   :  { %606 = vmatmul.msk.f32.gmra.mxu0 %vm41_vm0, %v104_v5  ;;  %608 = vmatmul.msk.f32.gmra.mxu1 %vm41_vm0, %v104_v5 }
 0x117   :  { %610 = vmatmul.msk.f32.gmra.mxu2 %vm41_vm0, %v104_v5 }
 0x18b   :  { %v900_v9 = vpop.f32.mrf.mxu0  ;;  %v969_v56 = vpop.f32.mrf.mxu1 }
 0x18c   :  { %v244_v10 = vmul.f32 %v239_v8, %v900_v9  ;;  %v236_v20 = vmul.f32 %v231_v17, %v900_v9  ;;  %v394_v3 = vmul.f32 %v853_v44, %v969_v56  ;;  %v526_v8 = vld [vmem:[%s1122_s9 + $0x98] sm:$0xff]  ;;  %v524_v44 = vld [vmem:[%s1122_s9 + $0x88] sm:$0xff] }
 0x18d   :  { %572 = vmatpush.msrb.mxu2 %v526_v8 }
 0x18e   :  { %248 = vrot.lane.b32.xlu2 %v244_v10, %s705_s28 }
 0x192   :  { %v186_v10 = vpop.f32.mrf.mxu2 }
 0x193   :  { %v904_v11 = vpop.f32.mrf.mxu0  ;;  %v971_v58 = vpop.f32.mrf.mxu1 }
 0x194   :  { %v245_v12 = vmul.f32 %v241_v7, %v904_v11  ;;  %v237_v26 = vmul.f32 %v233_v19, %v904_v11  ;;  %v395_v62 = vmul.f32 %v896_v6, %v971_v58  ;;  %v525_v6 = vld [vmem:[%s1122_s9 + $0x90] sm:$0xff] }
 0x195   :  { %573 = vmatpush.msrb.mxu2 %v525_v6 }
 0x196   :  { %282 = vrot.lane.b32.xlu2 %v910_v13, %s706_s3  ;;  %250 = vrot.lane.b32.xlu1 %v245_v12, %s705_s28  ;;  %v523_v12 = vld [vmem:[%s1122_s9 + $0x80] sm:$0xff] }
 0x197   :  { %574 = vmatpush.msrb.mxu2 %v524_v44 }
 0x199   :  { %575 = vmatpush.msrb.mxu2 %v523_v12 }
 0x19e   :  { %276 = vrot.lane.b32.xlu2 %v918_v14, %s706_s3  ;;  %280 = vrot.lane.b32.xlu1 %v923_v15, %s706_s3 }
 0x1a6   :  { %210 = vrot.lane.b32.xlu2 %v204_v43, %s707_s30  ;;  %274 = vrot.lane.b32.xlu1 %v932_v16, %s706_s3 }
 0x1ae   :  { %212 = vrot.lane.b32.xlu1 %v836_v36, %s707_s30 }
 0x1e8   :  { %v249_v21 = vpop.permute.xlu2 %248 }
 0x1e9   :  { %v254_v22 = vadd.f32 %v249_v21, %v236_v20  ;;  %v189_v20 = vpop.f32.mrf.mxu2 }
 0x1eb   :  { %v302_v24 = vmul.f32 %v285_v23, %v254_v22  ;;  %v296_v39 = vmul.f32 %v273_v35, %v254_v22 }
 0x1ed   :  { %326 = vrot.lane.b32.xlu2 %v302_v24, %s706_s3 }
 0x1f0   :  { %v283_v25 = vpop.permute.xlu2 %282 }
 0x1f8   :  { %v277_v33 = vpop.permute.xlu2 %276 }
 0x1f9   :  { %v298_v36 = vmul.f32 %v277_v33, %v254_v22 }
 0x200   :  { %v211_v40 = vpop.permute.xlu2 %210 }
 0x201   :  { %v216_v43 = vmul.f32 %v211_v40, %v900_v9 }
 0x208   :  { %v251_v28 = vpop.permute.xlu1 %250 }
 0x209   :  { %v255_v29 = vadd.f32 %v251_v28, %v237_v26 }
 0x20b   :  { %v303_v30 = vmul.f32 %v287_v18, %v255_v29  ;;  %v301_v31 = vmul.f32 %v283_v25, %v255_v29  ;;  %v299_v32 = vmul.f32 %v279_v27, %v255_v29 }
 0x20d   :  { %328 = vrot.lane.b32.xlu0 %v303_v30, %s706_s3  ;;  %324 = vrot.lane.b32.xlu1 %v301_v31, %s706_s3 }
 0x20e   :  { %320 = vrot.lane.b32.xlu2 %v299_v32, %s706_s3 }
 0x210   :  { %v281_v34 = vpop.permute.xlu1 %280 }
 0x211   :  { %v300_v38 = vmul.f32 %v281_v34, %v254_v22 }
 0x215   :  { %322 = vrot.lane.b32.xlu0 %v300_v38, %s706_s3  ;;  %318 = vrot.lane.b32.xlu1 %v298_v36, %s706_s3  ;;  %v206_v36 = vmul.f32 %v861_v51, %v900_v9 }
 0x216   :  { %314 = vrot.lane.b32.xlu2 %v296_v39, %s706_s3 }
 0x218   :  { %v275_v41 = vpop.permute.xlu1 %274 }
 0x219   :  { %v297_v45 = vmul.f32 %v275_v41, %v255_v29 }
 0x21d   :  { %220 = vrot.lane.b32.xlu1 %v216_v43, %s705_s28  ;;  %316 = vrot.lane.b32.xlu0 %v297_v45, %s706_s3 }
 0x21e   :  { %633 = vrot.lane.b32.xlu2 %v632_v42, %s707_s30  ;;  %v393_v42 = vmul.f32 %v910_v13, %v971_v58 }
 0x220   :  { %v213_v46 = vpop.permute.xlu1 %212 }
 0x221   :  { %v217_v48 = vmul.f32 %v213_v46, %v904_v11  ;;  %v392_v46 = vmul.f32 %v923_v15, %v969_v56  ;;  %v390_v15 = vmul.f32 %v918_v14, %v969_v56 }
 0x225   :  { %222 = vrot.lane.b32.xlu0 %v217_v48, %s705_s28  ;;  %v207_v48 = vmul.f32 %v841_v37, %v904_v11 }
 0x226   :  { %643 = vrot.lane.b32.xlu2 %v642_v47, %s707_s30 }
 0x22d   :  { %638 = vrot.lane.b32.xlu0 %v637_v49, %s707_s30  ;;  %v391_v49 = vmul.f32 %v866_v52, %v971_v58  ;;  %v389_v52 = vmul.f32 %v932_v16, %v971_v58  ;;  %v304_v16 = vld [vmem:[%s1121_s8] sm:$0xff] }
 0x22e   :  { %648 = vrot.lane.b32.xlu2 %v647_v50, %s707_s30 }
 0x236   :  { %195 = vrot.lane.b32.xlu2 %v654_v53, %s707_s30 }
 0x247   :  { %v327_v54 = vpop.permute.xlu2 %326 }
 0x268   :  { %v321_v55 = vpop.permute.xlu2 %320 }
 0x270   :  { %v315_v57 = vpop.permute.xlu2 %314 }
 0x278   :  { %v634_v59 = vpop.permute.xlu2 %633 }
 0x279   :  { %v636_v60 = vunpack.i.h.bf16 %v634_v59  ;;  %v635_v61 = vunpack.i.l.bf16 %v634_v59 }
 0x27b   :  { %v427_v1 = vsel %vm41_vm0, %v395_v62, %v635_v61  ;;  %v426_v4 = vsel %vm41_vm0, %v394_v3, %v636_v60  ;;  %v388_v62 = vmul.f32 %v882_v63, %v969_v56  ;;  %v305_v63 = vld [vmem:[%s1121_s8 + $0x8] sm:$0xff] }
 0x27c   :  { %442 = vmatpush.msrb.mxu0 %v427_v1 }
 0x27e   :  { %443 = vmatpush.msrb.mxu0 %v426_v4 }
 0x27f   :  { %v329_v5 = vpop.permute.xlu0 %328  ;;  %v325_v17 = vpop.permute.xlu1 %324 }
 0x280   :  { %v979_v7 = vpop.permute.xlu2 %643  ;;  %611 = vmatpush.xpose.msk.msra.mxu3 %vm41_vm0, %v329_v5 }
 0x281   :  { %v645_v51 = vunpack.i.l.bf16 %v979_v7  ;;  %v646_v13 = vunpack.i.h.bf16 %v979_v7 }
 0x283   :  { %v423_v59 = vsel %vm41_vm0, %v391_v49, %v645_v51  ;;  %v422_v61 = vsel %vm41_vm0, %v390_v15, %v646_v13 }
 0x284   :  { %612 = vmatpush.xpose.msk.msra.mxu3 %vm41_vm0, %v327_v54 }
 0x287   :  { %v323_v18 = vpop.permute.xlu0 %322  ;;  %v319_v22 = vpop.permute.xlu1 %318 }
 0x288   :  { %v995_v19 = vpop.permute.xlu2 %648  ;;  %613 = vmatpush.xpose.msk.msra.mxu3 %vm41_vm0, %v325_v17 }
 0x289   :  { %v651_v60 = vunpack.i.h.bf16 %v995_v19 }
 0x28b   :  { %v420_v3 = vsel %vm41_vm0, %v388_v62, %v651_v60 }
 0x28c   :  { %614 = vmatpush.xpose.msk.msra.mxu3 %vm41_vm0, %v323_v18 }
 0x28f   :  { %v317_v21 = vpop.permute.xlu0 %316  ;;  %v221_v35 = vpop.permute.xlu1 %220 }
 0x290   :  { %v999_v23 = vpop.permute.xlu2 %195  ;;  %615 = vmatpush.xpose.msk.msra.mxu3 %vm41_vm0, %v321_v55  ;;  %v226_v39 = vadd.f32 %v221_v35, %v206_v36  ;;  %v513_v36 = vld [vmem:[%s1122_s9 + $0x30] sm:$0xff] }
 0x291   :  { %v199_v24 = vadd.f32 %v999_v23, %v186_v10  ;;  %v201_v25 = vadd.f32 %v999_v23, %v189_v20 }
 0x293   :  { %v474_v26 = vmul.f32 0.044715, %v199_v24  ;;  %v476_v27 = vmul.f32 0.044715, %v201_v25  ;;  %v470_v53 = vmul.f32 0.5, %v199_v24  ;;  %v472_v4 = vmul.f32 0.5, %v201_v25 }
 0x294   :  { %616 = vmatpush.xpose.msk.msra.mxu3 %vm41_vm0, %v319_v22 }
 0x295   :  { %v478_v28 = vmul.f32 %v474_v26, %v199_v24  ;;  %v480_v29 = vmul.f32 %v476_v27, %v201_v25  ;;  %v522_v26 = vld [vmem:[%s1122_s9 + $0x78] sm:$0xff]  ;;  %v521_v27 = vld [vmem:[%s1122_s9 + $0x70] sm:$0xff] }
 0x296   :  { %537 = vmatpush.msrb.mxu1 %v522_v26 }
 0x297   :  { %v223_v30 = vpop.permute.xlu0 %222  ;;  %v482_v31 = vmul.f32 %v478_v28, %v199_v24  ;;  %v484_v32 = vmul.f32 %v480_v29, %v201_v25  ;;  %v520_v28 = vld [vmem:[%s1122_s9 + $0x68] sm:$0xff]  ;;  %v519_v29 = vld [vmem:[%s1122_s9 + $0x60] sm:$0xff] }
 0x298   :  { %617 = vmatpush.xpose.msk.msra.mxu3 %vm41_vm0, %v317_v21  ;;  %v227_v55 = vadd.f32 %v223_v30, %v207_v48  ;;  %538 = vmatpush.msrb.mxu1 %v521_v27  ;;  %v518_v30 = vld [vmem:[%s1122_s9 + $0x58] sm:$0xff]  ;;  %v200_v48 = vadd.f32 %v999_v23, %v971_v58 }
 0x299   :  { %v486_v33 = vadd.f32 %v482_v31, %v199_v24  ;;  %v488_v34 = vadd.f32 %v484_v32, %v201_v25  ;;  %v517_v31 = vld [vmem:[%s1122_s9 + $0x50] sm:$0xff]  ;;  %v516_v32 = vld [vmem:[%s1122_s9 + $0x48] sm:$0xff] }
 0x29a   :  { %539 = vmatpush.msrb.mxu1 %v520_v28  ;;  %v471_v62 = vmul.f32 0.5, %v200_v48 }
 0x29b   :  { %v490_v38 = vmul.f32 0.7978846, %v486_v33  ;;  %v492_v40 = vmul.f32 0.7978846, %v488_v34  ;;  %v515_v33 = vld [vmem:[%s1122_s9 + $0x40] sm:$0xff]  ;;  %v514_v34 = vld [vmem:[%s1122_s9 + $0x38] sm:$0xff] }
 0x29c   :  { %618 = vmatpush.xpose.msk.msra.mxu3 %vm41_vm0, %v315_v57  ;;  %v650_v57 = vunpack.i.l.bf16 %v995_v19  ;;  %540 = vmatpush.msrb.mxu1 %v519_v29 }
 0x29d   :  { %662 = vtanh.f32 %v490_v38  ;;  %v512_v38 = vld [vmem:[%s1122_s9 + $0x28] sm:$0xff] }
 0x29e   :  { %664 = vtanh.f32 %v492_v40  ;;  %v421_v14 = vsel %vm41_vm0, %v389_v52, %v650_v57  ;;  %541 = vmatpush.msrb.mxu1 %v518_v30  ;;  %v510_v40 = vld [vmem:[%s1122_s9 + $0x18] sm:$0xff] }
 0x29f   :  { %619 = vmatmul.msk.f32.vlgmr.msra.gmra.mxu3 %vm41_vm0, %v226_v39  ;;  %v639_v41 = vpop.permute.xlu0 %638  ;;  %v511_v39 = vld [vmem:[%s1122_s9 + $0x20] sm:$0xff] }
 0x2a0   :  { %v641_v43 = vunpack.i.h.bf16 %v639_v41  ;;  %v640_v45 = vunpack.i.l.bf16 %v639_v41  ;;  %542 = vmatpush.msrb.mxu1 %v517_v31 }
 0x2a2   :  { %v425_v9 = vsel %vm41_vm0, %v393_v42, %v640_v45  ;;  %v424_v50 = vsel %vm41_vm0, %v392_v46, %v641_v43  ;;  %543 = vmatpush.msrb.mxu1 %v516_v32  ;;  %v509_v43 = vld [vmem:[%s1122_s9 + $0x10] sm:$0xff]  ;;  %v198_v46 = vadd.f32 %v999_v23, %v969_v56 }
 0x2a3   :  { %v663_v47 = vpop.eup %662  ;;  %444 = vmatpush.msrb.mxu0 %v425_v9  ;;  %v508_v9 = vld [vmem:[%s1122_s9 + $0x8] sm:$0xff] }
 0x2a4   :  { %v498_v54 = vadd.f32 1.0, %v663_v47  ;;  %v665_v11 = vpop.eup %664  ;;  %544 = vmatpush.msrb.mxu1 %v515_v33  ;;  %v473_v51 = vmul.f32 0.044715, %v198_v46  ;;  %v507_v47 = vld [vmem:[%s1122_s9] sm:$0xff] }
 0x2a5   :  { %445 = vmatpush.msrb.mxu0 %v424_v50  ;;  %v500_v1 = vadd.f32 1.0, %v665_v11  ;;  %v475_v50 = vmul.f32 0.044715, %v200_v48  ;;  %v469_v11 = vmul.f32 0.5, %v198_v46 }
 0x2a6   :  { %v502_v37 = vmul.f32 %v498_v54, %v470_v53  ;;  %545 = vmatpush.msrb.mxu1 %v514_v34  ;;  %v477_v49 = vmul.f32 %v473_v51, %v198_v46 }
 0x2a7   :  { %620 = vmatmul.msk.f32.gmra.mxu3 %vm41_vm0, %v227_v55  ;;  %446 = vmatpush.msrb.mxu0 %v423_v59  ;;  %v504_v5 = vmul.f32 %v500_v1, %v472_v4  ;;  %v479_v54 = vmul.f32 %v475_v50, %v200_v48 }
 0x2a8   :  { %623 = vmatmul.msk.f32.vlgmr.msrb.gmra.mxu2 %vm41_vm0, %v502_v37  ;;  %546 = vmatpush.msrb.mxu1 %v513_v36  ;;  %v481_v13 = vmul.f32 %v477_v49, %v198_v46 }
 0x2a9   :  { %447 = vmatpush.msrb.mxu0 %v422_v61  ;;  %v483_v55 = vmul.f32 %v479_v54, %v200_v48 }
 0x2aa   :  { %547 = vmatpush.msrb.mxu1 %v512_v38  ;;  %v485_v53 = vadd.f32 %v481_v13, %v198_v46 }
 0x2ab   :  { %448 = vmatpush.msrb.mxu0 %v421_v14  ;;  %v487_v15 = vadd.f32 %v483_v55, %v200_v48 }
 0x2ac   :  { %548 = vmatpush.msrb.mxu1 %v511_v39  ;;  %v489_v56 = vmul.f32 0.7978846, %v485_v53 }
 0x2ad   :  { %449 = vmatpush.msrb.mxu0 %v420_v3  ;;  %v491_v57 = vmul.f32 0.7978846, %v487_v15 }
 0x2ae   :  { %549 = vmatpush.msrb.mxu1 %v510_v40 }
 0x2b0   :  { %624 = vmatmul.msk.f32.gmra.mxu2 %vm41_vm0, %v504_v5  ;;  %550 = vmatpush.msrb.mxu1 %v509_v43 }
 0x2b2   :  { %551 = vmatpush.msrb.mxu1 %v508_v9 }
 0x2b4   :  { %552 = vmatpush.msrb.mxu1 %v507_v47 }
 0x322   :  { %v369_v7 = vpop.f32.mrf.mxu3 }
 0x323   :  { %v370_v8 = vadd.f32 %v369_v7, %v304_v16  ;;  %v655_v16 = vld [vmem:[%s1123_s10] ss:$0 sm:$0xff]  ;;  %s709_s10 = smov 128  }
 0x325   :  { %v376_v6 = vsel %vm375_vm8, %v370_v8, -inf }
 0x326   :  { %377 = vmax.xlane.f32.xlu1 %v376_v6 }
 0x32a   :  { %v372_v44 = vpop.f32.mrf.mxu3 }
 0x32b   :  { %v373_v10 = vadd.f32 %v372_v44, %v305_v63  ;;  %v577_v7 = vpop.f32.mrf.mxu2 }
 0x32d   :  { %v379_v12 = vsel %vm375_vm8, %v373_v10, -inf }
 0x32e   :  { %380 = vmax.xlane.f32.xlu0 %v379_v12 }
 0x399   :  { %v378_v17 = vpop.xlane.xlu1 %377 }
 0x39a   :  { %v382_v18 = vsub.f32 %v370_v8, %v378_v17  ;;  %v580_v17 = vpop.f32.mrf.mxu2 }
 0x39c   :  { %v384_v19 = vmul.f32 1.442695, %v382_v18 }
 0x39e   :  { %666 = vpow2.f32 %v384_v19 }
 0x3a1   :  { %v381_v20 = vpop.xlane.xlu0 %380 }
 0x3a2   :  { %v383_v21 = vsub.f32 %v373_v10, %v381_v20 }
 0x3a4   :  { %v667_v22 = vpop.eup %666  ;;  %v386_v24 = vmul.f32 1.442695, %v383_v21 }
 0x3a5   :  { %621 = vmatmul.msk.f32.vlgmr.msrb.gmra.mxu0 %vm375_vm8, %v667_v22 }
 0x3a6   :  { %668 = vpow2.f32 %v386_v24 }
 0x3ac   :  { %v669_v25 = vpop.eup %668 }
 0x3ad   :  { %622 = vmatmul.msk.f32.gmra.mxu0 %vm375_vm8, %v669_v25 }
 0x422   :  { %v451_v35 = vpop.f32.mrf.mxu0 }
 0x423   :  { %670 = vrcp.f32 %v451_v35 }
 0x429   :  { %v671_v41 = vpop.eup %670 }
 0x42a   :  { %461 = vrot.lane.b32.xlu2 %v671_v41, %s705_s28  ;;  %v454_v42 = vpop.f32.mrf.mxu0 }
 0x42b   :  { %672 = vrcp.f32 %v454_v42 }
 0x42c   :  { %674 = vtanh.f32 %v489_v56 }
 0x42d   :  { %676 = vtanh.f32 %v491_v57 }
 0x431   :  { %v673_v45 = vpop.eup %672 }
 0x432   :  { %463 = vrot.lane.b32.xlu2 %v673_v45, %s705_s28  ;;  %v675_v59 = vpop.eup %674 }
 0x433   :  { %v497_v37 = vadd.f32 1.0, %v675_v59  ;;  %v677_v14 = vpop.eup %676 }
 0x434   :  { %v499_v23 = vadd.f32 1.0, %v677_v14 }
 0x435   :  { %v501_v61 = vmul.f32 %v497_v37, %v469_v11 }
 0x436   :  { %v503_v4 = vmul.f32 %v499_v23, %v471_v62 }
 0x484   :  { %v462_v52 = vpop.permute.xlu2 %461 }
 0x485   :  { %v467_v60 = vmul.f32 %v462_v52, %v451_v35 }
 0x487   :  { %v505_v58 = vsel %vm41_vm0, %v467_v60, %v501_v61 }
 0x488   :  { %553 = vmatmul.f32.vlgmr.msrb.gmra.mxu1 %v505_v58 }
 0x48c   :  { %v464_v1 = vpop.permute.xlu2 %463 }
 0x48d   :  { %v468_v3 = vmul.f32 %v464_v1, %v454_v42 }
 0x48f   :  { %v506_v5 = vsel %vm41_vm0, %v468_v3, %v503_v4 }
 0x490   :  { %556 = vmatmul.f32.gmra.mxu1 %v506_v5 }
 0x505   :  { %v554_v8 = vpop.f32.mrf.mxu1 }
 0x506   :  { %v555_v6 = vadd.f32 %v655_v16, %v554_v8 }
 0x508   :  { %v578_v63 = vadd.f32 %v577_v7, %v555_v6 }
 0x50a   :  { %v583_v44 = vadd.f32 %v578_v63, %v774_v0 }
 0x50c   :  { %585 = vst.msk [vmem:[#allocation2] sm:$0xff] %vm41_vm0, %v583_v44 }
 0x50d   :  { %v557_v10 = vpop.f32.mrf.mxu1 }
 0x50e   :  { %v558_v12 = vadd.f32 %v655_v16, %v557_v10 }
 0x510   :  { %v581_v18 = vadd.f32 %v580_v17, %v558_v12 }
 0x512   :  { %v584_v19 = vadd.f32 %v581_v18, %v781_v2 }
 0x514   :  { %586 = vst.msk [vmem:[#allocation2 + $0x8] sm:$0xff] %vm41_vm0, %v584_v19 }
 0x515   :  { %599 = dma.vmem_to_hbm [thread:$0]  %s592_s23, 256, %s594_s26, [#allocation3], %s709_s10, %s709_s10, %s710_s27  }
 0x516   :  { %702 = dma.done.wait [#allocation3], 256  }
 0x517   :  { %703 = vsyncadd [#allocation3], 4294967040 }
 0x518   :  { %604 = vsyncpa [#allocation3], 1 }

</bundles_post_ra>
